<compile_context>
chip_gen: v7x
topology: tpu7x:2x2x1
jax: 0.10.0
libtpu: 0.0.40
codegen_flags: <defaults>
</compile_context>

<pallas_src>
import jax
import jax.numpy as jnp
from jax import lax
from jax.experimental import pallas as pl
from jax.experimental.pallas import tpu as pltpu


def adv_net_kernel(x_ref, w1_ref, b1_ref, w2_ref, b2_ref, w3_ref, b3_ref, o_ref):
    compute_dtype = w1_ref.dtype
    # Layer 1: h1^T = relu(W1f ._in x_tile + b1f)  -> (hidden, bb).
    # x_tile is untransposed (bb, in); contract in_feature on both operands.
    h1 = lax.dot_general(
        w1_ref[...], x_ref[...],
        dimension_numbers=(((1,), (1,)), ((), ())),
        preferred_element_type=jnp.float32)
    h1 = jnp.maximum(h1 + b1_ref[...], 0.0)
    # Layer 2: h2^T = relu(W2f @ h1^T + b2f)       -> (hidden, bb).
    h2 = jnp.dot(w2_ref[...], h1.astype(compute_dtype),
                 preferred_element_type=jnp.float32)
    h2 = jnp.maximum(h2 + b2_ref[...], 0.0)
    # Layer 3: hidden -> 1.  An N=1 MXU matmul wastes the MXU; use a VPU
    # multiply + sublane reduction -> lane-dense (1, bb) output row.
    y = jnp.sum(h2 * w3_ref[...], axis=0, keepdims=True) + b3_ref[0]
    o_ref[...] = jax.nn.sigmoid(y).astype(o_ref.dtype)


def _round_up(n, m):
    return (n + m - 1) // m * m


def _resident_kwargs():
    """Single-buffer kwargs for grid-invariant BlockSpecs (if supported)."""
    try:
        kw = dict(pipeline_mode=pl.Buffered(1))
        pl.BlockSpec((8, 128), lambda i: (0, 0), **kw)   # construction smoke-test
        return kw
    except Exception:
        return {}


def adversarial_network_forward(x, params, *, block_b=512,
                                compute_dtype=jnp.float32, bn_eps=1e-5):
    """x: [B, in_feature]; params: dict in PyTorch layout (see make_params)."""
    B, in_feature = x.shape
    hidden = params["w1"].shape[0]

    # ---- fold eval-mode BatchNorm into the linear layers (exact) -----------
    # NOTE: in the bf16 path the BN scale gamma/sqrt(var+eps) is folded into
    # the weights before the cast; bf16 relative error is scale-invariant, but
    # for pathologically small running variances keep compute_dtype=float32.
    def fold_bn(w, b, gamma, beta, mean, var):
        scale = gamma / jnp.sqrt(var + bn_eps)            # [hidden]
        return w * scale[:, None], (b - mean) * scale + beta

    w1f, b1f = fold_bn(params["w1"], params["b1"], params["gamma1"],
                       params["beta1"], params["mean1"], params["var1"])
    w2f, b2f = fold_bn(params["w2"], params["b2"], params["gamma2"],
                       params["beta2"], params["mean2"], params["var2"])

    w1f = w1f.astype(compute_dtype)                        # [hidden, in]
    w2f = w2f.astype(compute_dtype)                        # [hidden, hidden]
    b1c = b1f.astype(jnp.float32).reshape(hidden, 1)       # f32 column biases
    b2c = b2f.astype(jnp.float32).reshape(hidden, 1)
    w3c = params["w3"].astype(jnp.float32).reshape(hidden, 1)   # [1,hidden] -> col
    b3s = params["b3"].astype(jnp.float32).reshape(1)           # SMEM scalar

    # ---- lane-dense batch tiling -------------------------------------------
    assert block_b % 128 == 0, "block_b must be a multiple of 128"
    B128 = _round_up(B, 128)                 # lane-dense output (unmasked vst)
    if B128 <= 128:
        bb = 128                             # single 128-lane step
    elif B128 <= block_b:
        # Split into >= 2 lane blocks (multiple of 128) so both v7x
        # TensorCores get work; neutral on single-TC v5e/v6e.
        bb = ((B128 // 128 + 1) // 2) * 128
    else:
        bb = block_b
    B_pad = _round_up(B, bb)
    grid = (B_pad // bb,)

    # x stays untransposed; pad batch rows only when B is not already a
    # multiple of bb (at production sizes with B % 128 == 0 this is a no-op,
    # so the kernel DMA reads x straight from its original HBM buffer).
    x_in = x.astype(compute_dtype)
    if B_pad != B:
        x_in = jnp.pad(x_in, ((0, B_pad - B), (0, 0)))

    itemsize = jnp.dtype(compute_dtype).itemsize

    # Rough VMEM budget: x double-buffered, weights single-buffered, f32
    # intermediates.  Only raise the scoped limit when actually needed.
    vmem_est = (2 * bb * in_feature * itemsize
                + (hidden * in_feature + hidden * hidden) * itemsize
                + 3 * hidden * 128 * 4                 # bias / w3 cols (lane pad)
                + 2 * bb * 4                           # output row (double-buffered)
                + 4 * hidden * bb * 4)                 # live f32 intermediates
    vmem_limit = None
    if vmem_est > 30 * 1024 * 1024:
        vmem_limit = int(min(110 * 1024 * 1024, vmem_est * 3 // 2))
    # TODO(synk): once hidden >= ~2048 f32 (~2900 bf16) on v7x (64 MiB VMEM),
    # add a trailing "arbitrary" reduction grid axis over the contraction dim
    # with a VMEM accumulator (pl.when init/finalize) instead of keeping W2
    # fully resident; unnecessary on 128 MiB v5e/v6e at these sizes.

    cost = pl.CostEstimate(
        flops=2 * B_pad * (in_feature * hidden + hidden * hidden + hidden),
        transcendentals=B_pad,                         # sigmoid
        bytes_accessed=(B_pad * in_feature * itemsize
                        + (hidden * in_feature + hidden * hidden) * itemsize
                        + (3 * hidden + 1) * 4
                        + B_pad * 4),
    )

    resident = _resident_kwargs()                      # pipeline_mode=Buffered(1)
    out = pl.pallas_call(
        adv_net_kernel,
        out_shape=jax.ShapeDtypeStruct((1, B_pad), jnp.float32),
        grid_spec=pltpu.PrefetchScalarGridSpec(
            num_scalar_prefetch=0,
            grid=grid,
            in_specs=[
                pl.BlockSpec((bb, in_feature), lambda i: (i, 0)),            # x tile
                pl.BlockSpec((hidden, in_feature), lambda i: (0, 0), **resident),  # W1
                pl.BlockSpec((hidden, 1), lambda i: (0, 0), **resident),     # b1 col
                pl.BlockSpec((hidden, hidden), lambda i: (0, 0), **resident),  # W2
                pl.BlockSpec((hidden, 1), lambda i: (0, 0), **resident),     # b2 col
                pl.BlockSpec((hidden, 1), lambda i: (0, 0), **resident),     # w3 col
                pl.BlockSpec(memory_space=pltpu.MemorySpace.SMEM),           # b3
            ],
            out_specs=pl.BlockSpec((1, bb), lambda i: (0, i)),               # lane-dense
        ),
        compiler_params=pltpu.CompilerParams(
            dimension_semantics=("parallel",),
            vmem_limit_bytes=vmem_limit,
        ),
        cost_estimate=cost,
    )(x_in, w1f, b1c, w2f, b2c, w3c, b3s)

    return out[:, :B].T                                    # [B, 1], float32


def xavier_normal(key, out_features, in_features):
    """PyTorch nn.init.xavier_normal_ for a Linear weight of shape [out, in]."""
    std = (2.0 / (in_features + out_features)) ** 0.5
    return std * jax.random.normal(key, (out_features, in_features), jnp.float32)


def make_params(key, in_feature, hidden_size):
    """PyTorch layout; init matches init_weights() + BatchNorm1d defaults (eval)."""
    k1, k2, k3, kg1, kg2 = jax.random.split(key, 5)
    return dict(
        w1=xavier_normal(k1, hidden_size, in_feature),      # [hidden, in]
        b1=jnp.zeros((hidden_size,), jnp.float32),
        gamma1=1.0 + 0.02 * jax.random.normal(kg1, (hidden_size,), jnp.float32),
        beta1=jnp.zeros((hidden_size,), jnp.float32),
        mean1=jnp.zeros((hidden_size,), jnp.float32),
        var1=jnp.ones((hidden_size,), jnp.float32),
        w2=xavier_normal(k2, hidden_size, hidden_size),     # [hidden, hidden]
        b2=jnp.zeros((hidden_size,), jnp.float32),
        gamma2=1.0 + 0.02 * jax.random.normal(kg2, (hidden_size,), jnp.float32),
        beta2=jnp.zeros((hidden_size,), jnp.float32),
        mean2=jnp.zeros((hidden_size,), jnp.float32),
        var2=jnp.ones((hidden_size,), jnp.float32),
        w3=xavier_normal(k3, 1, hidden_size),               # [1, hidden]
        b3=jnp.zeros((1,), jnp.float32),
    )


def reference_forward(x, params, bn_eps=1e-5):
    def bn(z, g, b, m, v):
        return (z - m) / jnp.sqrt(v + bn_eps) * g + b

    h1 = x @ params["w1"].T + params["b1"]
    h1 = jnp.maximum(bn(h1, params["gamma1"], params["beta1"],
                        params["mean1"], params["var1"]), 0.0)
    h2 = h1 @ params["w2"].T + params["b2"]
    h2 = jnp.maximum(bn(h2, params["gamma2"], params["beta2"],
                        params["mean2"], params["var2"]), 0.0)
    return jax.nn.sigmoid(h2 @ params["w3"].T + params["b3"])


if __name__ == "__main__":
    # TODO(synk): training-mode dropout (p=0.5), BN running-stat updates and
    # the gradient-reversal coeff affect only training / backward; this kernel
    # implements the eval-mode forward.
    B, in_feature, hidden_size = 16, 32, 32

    key = jax.random.PRNGKey(0)
    k_x, k_p, k_x2 = jax.random.split(key, 3)
    x = jax.random.normal(k_x, (B, in_feature), jnp.float32)
    params = make_params(k_p, in_feature, hidden_size)

    y_ref = reference_forward(x, params)

    # float32 operand path (single 128-lane grid step).
    y = adversarial_network_forward(x, params, compute_dtype=jnp.float32)
    y = jax.block_until_ready(y)
    assert y.shape == (B, 1)
    assert jnp.allclose(y, y_ref, atol=1e-3, rtol=1e-3), "f32 kernel mismatch"

    # bfloat16 operand path (MXU fast path on v6e/v7x), f32 accumulation.
    y_bf16 = adversarial_network_forward(x, params, compute_dtype=jnp.bfloat16)
    y_bf16 = jax.block_until_ready(y_bf16)
    assert jnp.allclose(y_bf16, y_ref, atol=2e-2, rtol=2e-2), "bf16 kernel mismatch"

    # Multi-step grid path: batch split across >=2 lane blocks (v7x megacore),
    # with uneven batch -> padded lanes sliced off.
    B2 = 300
    x2 = jax.random.normal(k_x2, (B2, in_feature), jnp.float32)
    y2_ref = reference_forward(x2, params)
    y2 = adversarial_network_forward(x2, params, compute_dtype=jnp.float32)
    y2 = jax.block_until_ready(y2)
    assert y2.shape == (B2, 1)
    assert jnp.allclose(y2, y2_ref, atol=1e-3, rtol=1e-3), "multi-step kernel mismatch"

    print("KERNEL_OK")
</pallas_src>

<mosaic_0001>
module attributes {stable_mosaic.version = 11 : i64} {
  func.func @adv_net_kernel(%arg0: i32, %arg1: memref<128x32xf32, #tpu.memory_space<vmem>>, %arg2: memref<32x32xf32, #tpu.memory_space<vmem>>, %arg3: memref<32x1xf32, #tpu.memory_space<vmem>>, %arg4: memref<32x32xf32, #tpu.memory_space<vmem>>, %arg5: memref<32x1xf32, #tpu.memory_space<vmem>>, %arg6: memref<32x1xf32, #tpu.memory_space<vmem>>, %arg7: memref<1xf32, #tpu.memory_space<smem>>, %arg8: memref<1x128xf32, #tpu.memory_space<vmem>>) attributes {dimension_semantics = [#tpu.dimension_semantics<parallel>], iteration_bounds = array<i64: 1>, scalar_prefetch = 0 : i64, scratch_operands = 0 : i64, tpu.core_type = #tpu.core_type<tc>, window_params = [{transform_indices = @transform_0, window_bounds = array<i64: 128, 32>}, {pipeline_mode = #tpu.pipeline_mode<synchronous>, transform_indices = @transform_1, window_bounds = array<i64: 32, 32>}, {pipeline_mode = #tpu.pipeline_mode<synchronous>, transform_indices = @transform_2, window_bounds = array<i64: 32, 1>}, {pipeline_mode = #tpu.pipeline_mode<synchronous>, transform_indices = @transform_3, window_bounds = array<i64: 32, 32>}, {pipeline_mode = #tpu.pipeline_mode<synchronous>, transform_indices = @transform_4, window_bounds = array<i64: 32, 1>}, {pipeline_mode = #tpu.pipeline_mode<synchronous>, transform_indices = @transform_5, window_bounds = array<i64: 32, 1>}, {transform_indices = @transform_6, window_bounds = array<i64: 1>}, {transform_indices = @transform_7, window_bounds = array<i64: 1, 128>}]} {
    %c0 = arith.constant 0 : index
    %c0_0 = arith.constant 0 : index
    %0 = vector.load %arg2[%c0, %c0_0] : memref<32x32xf32, #tpu.memory_space<vmem>>, vector<32x32xf32>
    %c0_1 = arith.constant 0 : index
    %c0_2 = arith.constant 0 : index
    %1 = vector.load %arg1[%c0_1, %c0_2] : memref<128x32xf32, #tpu.memory_space<vmem>>, vector<128x32xf32>
    %cst = arith.constant dense<0.000000e+00> : vector<32x128xf32>
    %2 = tpu.matmul %0, %1, %cst {dimension_numbers = #tpu.dot_dimension_numbers<[1], [1], [0], [0], [0, 0, 1, 0], [], []>} : vector<32x32xf32>, vector<128x32xf32>, vector<32x128xf32> -> vector<32x128xf32>
    %c0_3 = arith.constant 0 : index
    %c0_4 = arith.constant 0 : index
    %3 = vector.load %arg3[%c0_3, %c0_4] : memref<32x1xf32, #tpu.memory_space<vmem>>, vector<32x1xf32>
    %4 = vector.broadcast %3 : vector<32x1xf32> to vector<32x128xf32>
    %5 = arith.addf %2, %4 : vector<32x128xf32>
    %cst_5 = arith.constant 0.000000e+00 : f32
    %6 = vector.broadcast %cst_5 : f32 to vector<32x128xf32>
    %7 = arith.maximumf %5, %6 : vector<32x128xf32>
    %c0_6 = arith.constant 0 : index
    %c0_7 = arith.constant 0 : index
    %8 = vector.load %arg4[%c0_6, %c0_7] : memref<32x32xf32, #tpu.memory_space<vmem>>, vector<32x32xf32>
    %cst_8 = arith.constant dense<0.000000e+00> : vector<32x128xf32>
    %9 = tpu.matmul %8, %7, %cst_8 {dimension_numbers = #tpu.dot_dimension_numbers<[1], [0], [0], [1], [0, 0, 1, 1], [], []>} : vector<32x32xf32>, vector<32x128xf32>, vector<32x128xf32> -> vector<32x128xf32>
    %c0_9 = arith.constant 0 : index
    %c0_10 = arith.constant 0 : index
    %10 = vector.load %arg5[%c0_9, %c0_10] : memref<32x1xf32, #tpu.memory_space<vmem>>, vector<32x1xf32>
    %11 = vector.broadcast %10 : vector<32x1xf32> to vector<32x128xf32>
    %12 = arith.addf %9, %11 : vector<32x128xf32>
    %cst_11 = arith.constant 0.000000e+00 : f32
    %13 = vector.broadcast %cst_11 : f32 to vector<32x128xf32>
    %14 = arith.maximumf %12, %13 : vector<32x128xf32>
    %c0_12 = arith.constant 0 : index
    %c0_13 = arith.constant 0 : index
    %15 = vector.load %arg6[%c0_12, %c0_13] : memref<32x1xf32, #tpu.memory_space<vmem>>, vector<32x1xf32>
    %16 = vector.broadcast %15 : vector<32x1xf32> to vector<32x128xf32>
    %17 = arith.mulf %14, %16 : vector<32x128xf32>
    %cst_14 = arith.constant dense<0.000000e+00> : vector<128xf32>
    %18 = vector.multi_reduction <add>, %17, %cst_14 [0] : vector<32x128xf32> to vector<128xf32>
    %19 = vector.shape_cast %18 : vector<128xf32> to vector<1x128xf32>
    %c0_15 = arith.constant 0 : index
    %20 = memref.load %arg7[%c0_15] : memref<1xf32, #tpu.memory_space<smem>>
    %21 = vector.broadcast %20 : f32 to vector<1x128xf32>
    %22 = arith.addf %19, %21 : vector<1x128xf32>
    %23 = arith.negf %22 : vector<1x128xf32>
    %24 = math.exp %23 : vector<1x128xf32>
    %cst_16 = arith.constant 1.000000e+00 : f32
    %25 = vector.broadcast %cst_16 : f32 to vector<1x128xf32>
    %26 = arith.addf %25, %24 : vector<1x128xf32>
    %27 = arith.divf %25, %26 : vector<1x128xf32>
    %c0_17 = arith.constant 0 : index
    %c0_18 = arith.constant 0 : index
    %28 = vector.load %arg8[%c0_17, %c0_18] : memref<1x128xf32, #tpu.memory_space<vmem>>, vector<1x128xf32>
    tpu.vector_store %arg8[%c0_17, %c0_18], %27 {strides = array<i32>} : memref<1x128xf32, #tpu.memory_space<vmem>>, vector<1x128xf32>,
    return
  }
  func.func @transform_0(%arg0: i32) -> (i32, i32) {
    %c0_i32 = arith.constant 0 : i32
    %c0_i32_0 = arith.constant 0 : i32
    return %arg0, %c0_i32 : i32, i32
  }
  func.func @transform_1(%arg0: i32) -> (i32, i32) {
    %c0_i32 = arith.constant 0 : i32
    %c0_i32_0 = arith.constant 0 : i32
    %c0_i32_1 = arith.constant 0 : i32
    return %c0_i32, %c0_i32_0 : i32, i32
  }
  func.func @transform_2(%arg0: i32) -> (i32, i32) {
    %c0_i32 = arith.constant 0 : i32
    %c0_i32_0 = arith.constant 0 : i32
    %c0_i32_1 = arith.constant 0 : i32
    return %c0_i32, %c0_i32_0 : i32, i32
  }
  func.func @transform_3(%arg0: i32) -> (i32, i32) {
    %c0_i32 = arith.constant 0 : i32
    %c0_i32_0 = arith.constant 0 : i32
    %c0_i32_1 = arith.constant 0 : i32
    return %c0_i32, %c0_i32_0 : i32, i32
  }
  func.func @transform_4(%arg0: i32) -> (i32, i32) {
    %c0_i32 = arith.constant 0 : i32
    %c0_i32_0 = arith.constant 0 : i32
    %c0_i32_1 = arith.constant 0 : i32
    return %c0_i32, %c0_i32_0 : i32, i32
  }
  func.func @transform_5(%arg0: i32) -> (i32, i32) {
    %c0_i32 = arith.constant 0 : i32
    %c0_i32_0 = arith.constant 0 : i32
    %c0_i32_1 = arith.constant 0 : i32
    return %c0_i32, %c0_i32_0 : i32, i32
  }
  func.func @transform_6(%arg0: i32) -> i32 {
    %c0_i32 = arith.constant 0 : i32
    %c0_i32_0 = arith.constant 0 : i32
    return %c0_i32 : i32
  }
  func.func @transform_7(%arg0: i32) -> (i32, i32) {
    %c0_i32 = arith.constant 0 : i32
    %c0_i32_0 = arith.constant 0 : i32
    return %c0_i32, %arg0 : i32, i32
  }
}

</mosaic_0001>

<bundles_post_ra>
// kernel: tpu_custom_call.1
= control target key start
LH: loop header
LB: loop body
LE: loop exit
PB: predicated region body
PF: predicated region fallthrough
CT: control target
= control target key end

     0   :  { %vm72_vm0 = vcmask 261120   ;;  %v605_v6 = vmov 0   ;;  %s816_s0 = inlined_call_operand.vmem [shape: f32[128,32], index: 0, kind: input, shape index: {}]   ;;  %s817_s1 = inlined_call_operand.vmem [shape: f32[32,32], index: 1, kind: input, shape index: {}]   ;;  %s818_s2 = inlined_call_operand.vmem [shape: f32[32,1], index: 2, kind: input, shape index: {}]   ;;  %s819_s3 = inlined_call_operand.vmem [shape: f32[32,32], index: 3, kind: input, shape index: {}]   ;;  %s820_s4 = inlined_call_operand.vmem [shape: f32[32,1], index: 4, kind: input, shape index: {}]   ;;  %s821_s5 = inlined_call_operand.vmem [shape: f32[32,1], index: 5, kind: input, shape index: {}]   ;;  %s822_s6 = inlined_call_operand.<no memory space> [shape: f32[1], index: 6, kind: input, shape index: {}]   ;;  %s823_s7 = inlined_call_operand.hbm [shape: f32[1,128], index: 7, kind: output, shape index: {}]  }
   0x1   :  { %v32_v0 = vld [vmem:[%s816_s0] sm:$0xff]  ;;  %v33_v1 = vld [vmem:[%s816_s0 + $0x8] sm:$0xff]  ;;  %v34_v2 = vld [vmem:[%s816_s0 + $0x10] sm:$0xff]  ;;  %575 = vset.pattern.permute.xlu0 %v605_v6  ;;  %576 = vset.pattern.permute.xlu1 %v605_v6 }
   0x2   :  { %v517_v3 = vpack.c.bf16 %v33_v1, %v32_v0  ;;  %vm658_vm1 = vmpackc.low %vm72_vm0, %vm72_vm0  ;;  %v35_v5 = vld [vmem:[%s816_s0 + $0x18] sm:$0xff]  ;;  %v28_v8 = vld [vmem:[%s817_s1] sm:$0xff] }
   0x3   :  { %v523_v7 = vpack.c.bf16 %v35_v5, %v34_v2  ;;  %v36_v9 = vld [vmem:[%s816_s0 + $0x20] sm:$0xff]  ;;  %v37_v10 = vld [vmem:[%s816_s0 + $0x28] sm:$0xff]  ;;  %497 = vmatprep.mubr.msk.f32.mxu0 %vm72_vm0, %v28_v8  ;;  %v50_v12 = vld [vmem:[%s818_s2 + $0x10] sm:$0xff] }
   0x4   :  { %519 = vmatprep.subr.msk.bf16.mxu0 %vm658_vm1, %v517_v3  ;;  %v48_v11 = vld [vmem:[%s818_s2] sm:$0xff]  ;;  %64 = vperm.xlu1 %576, %v50_v12   ;;  %v529_v13 = vpack.c.bf16 %v37_v10, %v36_v9  ;;  %v49_v14 = vld [vmem:[%s818_s2 + $0x8] sm:$0xff]  ;;  %v51_v15 = vld [vmem:[%s818_s2 + $0x18] sm:$0xff] }
   0x5   :  { %522 = vmatpush3.bf16.xpose.msk.msra.mxu0 %vm658_vm1, %v517_v3  ;;  %54 = vperm.xlu0 %575, %v48_v11  }
   0x6   :  { %525 = vmatprep.subr.msk.bf16.mxu0 %vm658_vm1, %v523_v7 }
   0x7   :  { %13 = vsyncpa [#allocation4], 0  ;;  %v226_v16 = vld [vmem:[%s820_s4] sm:$0xff]  ;;  %v38_v17 = vld [vmem:[%s816_s0 + $0x30] sm:$0xff]  ;;  %s606_s21 = smov [#allocation3]  }
   0x8   :  { %69 = vperm.xlu1 %576, %v51_v15   ;;  %v39_v18 = vld [vmem:[%s816_s0 + $0x38] sm:$0xff]  ;;  %v227_v19 = vld [vmem:[%s820_s4 + $0x8] sm:$0xff]  ;;  %v228_v21 = vld [vmem:[%s820_s4 + $0x10] sm:$0xff]  ;;  %s404_s22 = sshll.u32 %s606_s21, 4  ;;  %s405_s22 = int_to_ptr.vmem [resolvable:$true] %s404_s22 }
   0x9   :  { %59 = vperm.xlu0 %575, %v49_v14   ;;  %v535_v20 = vpack.c.bf16 %v39_v18, %v38_v17  ;;  %v229_v22 = vld [vmem:[%s820_s4 + $0x18] sm:$0xff]  ;;  %v351_v23 = vld [vmem:[%s821_s5] sm:$0xff]  ;;  %v41_v25 = vld [vmem:[%s816_s0 + $0x48] sm:$0xff]  ;;  %s581_s23 = scalar_lea.vmem %s405_s22, 16  ;;  %s585_s24 = scalar_lea.vmem %s405_s22, 32 }
   0xa   :  { %v40_v24 = vld [vmem:[%s816_s0 + $0x40] sm:$0xff]  ;;  %v352_v26 = vld [vmem:[%s821_s5 + $0x8] sm:$0xff]  ;;  %v353_v28 = vld [vmem:[%s821_s5 + $0x10] sm:$0xff]  ;;  %p582_p0 = scmp.ne.s32.totalorder %s405_s22, %s581_s23  ;;  %p586_p1 = scmp.lt.s32.totalorder %s405_s22, %s405_s22 }
   0xb   :  { %v541_v27 = vpack.c.bf16 %v41_v25, %v40_v24  ;;  %v354_v29 = vld [vmem:[%s821_s5 + $0x18] sm:$0xff]  ;;  %v42_v30 = vld [vmem:[%s816_s0 + $0x50] sm:$0xff]  ;;  %v44_v33 = vld [vmem:[%s816_s0 + $0x60] sm:$0xff]  ;;  %p587_p2 = scmp.lt.s32.totalorder %s585_s24, %s581_s23 }
   0xc   :  { %237 = vperm.xlu1 %576, %v227_v19   ;;  %v43_v31 = vld [vmem:[%s816_s0 + $0x58] sm:$0xff]  ;;  %v45_v34 = vld [vmem:[%s816_s0 + $0x68] sm:$0xff]  ;;  %v46_v36 = vld [vmem:[%s816_s0 + $0x70] sm:$0xff] }
   0xd   :  { %528 = vmatpush3.bf16.xpose.msk.msra.mxu0 %vm658_vm1, %v523_v7  ;;  %232 = vperm.xlu0 %575, %v226_v16   ;;  %v547_v32 = vpack.c.bf16 %v43_v31, %v42_v30  ;;  %v553_v35 = vpack.c.bf16 %v45_v34, %v44_v33  ;;  %v47_v37 = vld [vmem:[%s816_s0 + $0x78] sm:$0xff]  ;;  %v29_v39 = vld [vmem:[%s817_s1 + $0x8] sm:$0xff]  ;;  %v30_v40 = vld [vmem:[%s817_s1 + $0x10] sm:$0xff]  ;;  %p588_p3 = por %p587_p2, %p586_p1 }
   0xe   :  { %531 = vmatprep.subr.msk.bf16.mxu0 %vm658_vm1, %v529_v13  ;;  %v559_v38 = vpack.c.bf16 %v47_v37, %v46_v36  ;;  %v31_v41 = vld [vmem:[%s817_s1 + $0x18] sm:$0xff]  ;;  %v222_v42 = vld [vmem:[%s819_s3] sm:$0xff]  ;;  %v223_v61 = vld [vmem:[%s819_s3 + $0x8] sm:$0xff] }
   0xf   :  { %511 = vmatprep.mubr.msk.f32.mxu1 %vm72_vm0, %v222_v42  ;;  %v224_v62 = vld [vmem:[%s819_s3 + $0x10] sm:$0xff]  ;;  %v225_v63 = vld [vmem:[%s819_s3 + $0x18] sm:$0xff]  ;;  %p589_p4 = pnand %p588_p3, %p582_p0 }
  0x10   :  { %247 = vperm.xlu1 %576, %v229_v22  }
  0x11   :  { %242 = vperm.xlu0 %575, %v228_v21  }
  0x14   :  { %362 = vperm.xlu1 %576, %v352_v26  }
  0x15   :  { %534 = vmatpush3.bf16.xpose.msk.msra.mxu0 %vm658_vm1, %v529_v13  ;;  %357 = vperm.xlu0 %575, %v351_v23  }
  0x16   :  { %537 = vmatprep.subr.msk.bf16.mxu0 %vm658_vm1, %v535_v20 }
  0x18   :  { %372 = vperm.xlu1 %576, %v354_v29  }
  0x19   :  { %367 = vperm.xlu0 %575, %v353_v28  }
  0x1d   :  { %540 = vmatpush3.bf16.xpose.msk.msra.mxu0 %vm658_vm1, %v535_v20 }
  0x1e   :  { %543 = vmatprep.subr.msk.bf16.mxu0 %vm658_vm1, %v541_v27 }
  0x25   :  { %546 = vmatpush3.bf16.xpose.msk.msra.mxu0 %vm658_vm1, %v541_v27 }
  0x26   :  { %549 = vmatprep.subr.msk.bf16.mxu0 %vm658_vm1, %v547_v32 }
  0x2d   :  { %552 = vmatpush3.bf16.xpose.msk.msra.mxu0 %vm658_vm1, %v547_v32  ;;  %v389_v32 = vstv %s822_s6 }
  0x2e   :  { %555 = vmatprep.subr.msk.bf16.mxu0 %vm658_vm1, %v553_v35 }
  0x35   :  { %558 = vmatpush3.bf16.xpose.msk.msra.mxu0 %vm658_vm1, %v553_v35 }
  0x36   :  { %561 = vmatprep.subr.msk.bf16.mxu0 %vm658_vm1, %v559_v38 }
  0x3d   :  { %564 = vmatpush3.bf16.xpose.msk.msra.mxu0 %vm658_vm1, %v559_v38 }
  0x44   :  { %498 = vmatmul.mubr.msk.f32.vlgmr.msra.gmra.mrb[0].mxu0 %vm72_vm0, %v29_v39 }
  0x45   :  { %500 = vmatprep.mubr.msk.f32.mxu0 %vm72_vm0, %v30_v40 }
  0x48   :  { %501 = vmatmul.mubr.msk.f32.gmra.mrb[2].mxu0 %vm72_vm0, %v31_v41 }
  0x83   :  { %v65_v44 = vpop.permute.xlu1 %64 }
  0x84   :  { %v55_v43 = vpop.permute.xlu0 %54 }
  0x87   :  { %v70_v51 = vpop.permute.xlu1 %69 }
  0x88   :  { %v60_v45 = vpop.permute.xlu0 %59 }
  0x8b   :  { %v238_v1 = vpop.permute.xlu1 %237 }
  0x8c   :  { %v233_v0 = vpop.permute.xlu0 %232 }
  0x8f   :  { %v248_v3 = vpop.permute.xlu1 %247 }
  0x90   :  { %v243_v2 = vpop.permute.xlu0 %242 }
  0x93   :  { %v363_v10 = vpop.permute.xlu1 %362 }
  0x94   :  { %v358_v8 = vpop.permute.xlu0 %357 }
  0x97   :  { %v373_v23 = vpop.permute.xlu1 %372 }
  0x98   :  { %v368_v21 = vpop.permute.xlu0 %367 }
 0x117   :  { %v499_v46 = vpop.f32.mrb[0].mxu0 }
 0x118   :  { %v205_v47 = vadd.f32 %v499_v46, %v60_v45  ;;  %v199_v48 = vpop.f32.mrb[1].mxu0 }
 0x119   :  { %v200_v49 = vadd.f32 %v199_v48, %v55_v43 }
 0x11a   :  { %v219_v50 = vmax.f32 %v205_v47, 0.0 }
 0x11b   :  { %v218_v52 = vmax.f32 %v200_v49, 0.0  ;;  %v502_v53 = vpop.f32.mrb[2].mxu0 }
 0x11c   :  { %v215_v54 = vadd.f32 %v502_v53, %v70_v51  ;;  %v209_v55 = vpop.f32.mrb[3].mxu0 }
 0x11d   :  { %v210_v56 = vadd.f32 %v209_v55, %v65_v44  ;;  %v565_v57 = vpack.c.bf16 %v219_v50, %v218_v52 }
 0x11e   :  { %v221_v58 = vmax.f32 %v215_v54, 0.0 }
 0x11f   :  { %v220_v59 = vmax.f32 %v210_v56, 0.0  ;;  %566 = vmatprep.subr.bf16.mxu1 %v565_v57 }
 0x120   :  { %568 = vmatpush3.bf16.msra.mxu1 %v565_v57 }
 0x121   :  { %v569_v60 = vpack.c.bf16 %v221_v58, %v220_v59 }
 0x123   :  { %570 = vmatprep.subr.bf16.mxu1 %v569_v60 }
 0x124   :  { %572 = vmatpush3.bf16.msra.mxu1 %v569_v60 }
 0x127   :  { %512 = vmatmul.mubr.msk.f32.vlgmr.msra.gmra.mrb[0].mxu1 %vm72_vm0, %v223_v61 }
 0x128   :  { %514 = vmatprep.mubr.msk.f32.mxu1 %vm72_vm0, %v224_v62 }
 0x12b   :  { %515 = vmatmul.mubr.msk.f32.gmra.mrb[2].mxu1 %vm72_vm0, %v225_v63 }
 0x1fa   :  { %v513_v4 = vpop.f32.mrb[0].mxu1 }
 0x1fb   :  { %v334_v5 = vadd.f32 %v513_v4, %v238_v1  ;;  %v328_v6 = vpop.f32.mrb[1].mxu1 }
 0x1fc   :  { %v329_v7 = vadd.f32 %v328_v6, %v233_v0 }
 0x1fd   :  { %v348_v9 = vmax.f32 %v334_v5, 0.0 }
 0x1fe   :  { %v347_v11 = vmax.f32 %v329_v7, 0.0  ;;  %v516_v12 = vpop.f32.mrb[2].mxu1 }
 0x1ff   :  { %v376_v13 = vmul.f32 %v363_v10, %v348_v9  ;;  %v344_v14 = vadd.f32 %v516_v12, %v248_v3  ;;  %v338_v15 = vpop.f32.mrb[3].mxu1 }
 0x200   :  { %v375_v16 = vmul.f32 %v358_v8, %v347_v11  ;;  %v339_v17 = vadd.f32 %v338_v15, %v243_v2 }
 0x201   :  { %v350_v19 = vmax.f32 %v344_v14, 0.0 }
 0x202   :  { %v379_v18 = vadd.f32 %v376_v13, %v375_v16  ;;  %v349_v20 = vmax.f32 %v339_v17, 0.0 }
 0x203   :  { %v378_v24 = vmul.f32 %v373_v23, %v350_v19 }
 0x204   :  { %v377_v22 = vmul.f32 %v368_v21, %v349_v20 }
 0x206   :  { %v380_v25 = vadd.f32 %v379_v18, %v377_v22 }
 0x208   :  { %v381_v26 = vadd.f32 %v380_v25, %v378_v24 }
 0x20a   :  { %v382_v27 = vrot.slane %v381_v26, 4 }
 0x20c   :  { %v383_v28 = vadd.f32 %v382_v27, %v381_v26 }
 0x20e   :  { %v384_v29 = vrot.slane %v383_v28, 2 }
 0x210   :  { %v385_v30 = vadd.f32 %v384_v29, %v383_v28 }
 0x212   :  { %v386_v31 = vrot.slane %v385_v30, 1 }
 0x214   :  { %v387_v33 = vadd.f32 %v386_v31, %v385_v30 }
 0x216   :  { %v390_v34 = vadd.f32 %v389_v32, %v387_v33 }
 0x218   :  { %v436_v35 = vmul.f32 -1.442695, %v390_v34 }
 0x21a   :  { %577 = vpow2.f32 %v436_v35 }
 0x224   :  { %v578_v36 = vpop.eup %577 }
 0x225   :  { %v394_v37 = vadd.f32 1.0, %v578_v36 }
 0x227   :  { %579 = vrcp.f32 %v394_v37 }
 0x231   :  { %v580_v38 = vpop.eup %579 }
 0x232   :  { %397 = vst [vmem:[#allocation3] sm:$0x1] %v580_v38 }
 0x233   :  { %592 = shalt.err (!%p589_p4)
}
 0x234   :  { %s593_s5 = scalar_lea.hbm %s823_s7, 16 }
 0x235   :  { %p594_p5 = scmp.ne.s32.totalorder %s823_s7, %s593_s5  ;;  %p597_p6 = scmp.lt.u32.totalorder %s593_s5, %s823_s7 }
 0x237   :  { %p599_p7 = pnand %p597_p6, %p594_p5 }
 0x239   :  { %602 = shalt.err (!%p599_p7)
}
 0x23a   :  { %407 = dma.vmem_to_hbm [thread:$0]  %s405_s22, 16, %s823_s7, [#allocation4]  }
 0x23b   :  { %603 = dma.done.wait [#allocation4], 16  }
 0x23c   :  { %604 = vsyncadd [#allocation4], 4294967280 }
 0x23d   :  { %411 = vsyncpa [#allocation4], 1 }

</bundles_post_ra>
